<compile_context>
chip_gen: v6e
topology: v6e:2x2x1
jax: 0.10.0
libtpu: 0.0.40
codegen_flags: <defaults>
</compile_context>

<pallas_src>
import jax
import jax.numpy as jnp
from jax.experimental import pallas as pl
from jax.experimental.pallas import tpu as pltpu

_BN_EPS = 1e-5
_F32_MAX = float(jnp.finfo(jnp.float32).max)


def _round_up(x, m):
    return -(-x // m) * m


def _tcn_kernel(x_ref, w_ref, scale_ref, shift_ref, o_ref, flag_ref):
    """One row-block of the banded-matmul temporal convolution.

    x_ref:     (R, T*C_in)        f32   lane-dense input rows
    w_ref:     (T*C_in, T*C_out)  bf16  banded conv weight (VMEM resident)
    scale_ref: (1, T*C_out)       f32   folded BN scale, tiled per time step
    shift_ref: (1, T*C_out)       f32   folded conv-bias+BN shift, tiled
    o_ref:     (R, T*C_out)       f32   lane-dense output rows
    flag_ref:  (1, 1, 1)          f32   > 0 iff this block saw NaN/Inf
    """
    x = x_ref[...]                                                    # (R, T*C_in) f32

    # Whole dilated conv for this block: one MXU matmul, bf16 operands, f32 accum.
    acc = jnp.dot(x.astype(jnp.bfloat16), w_ref[...],
                  preferred_element_type=jnp.float32)                 # (R, T*C_out)

    # Folded conv bias + BatchNorm(eval) + ReLU (dropout is identity in eval).
    y = jnp.maximum(acc * scale_ref[...] + shift_ref[...], 0.0)
    o_ref[...] = y

    # Fused NaN/Inf guard: isfinite(v) == (abs(v) <= F32_MAX); False for +/-inf, NaN.
    bad_in = jnp.max(jnp.where(jnp.abs(x) <= _F32_MAX, 0.0, 1.0))
    bad_out = jnp.max(jnp.where(jnp.abs(y) <= _F32_MAX, 0.0, 1.0))
    flag_ref[...] = jnp.broadcast_to(jnp.maximum(bad_in, bad_out), (1, 1, 1))


def _vmem_capacity_bytes():
    """Physical per-core VMEM; conservative fallback if the query is unavailable."""
    try:
        info = pltpu.get_tpu_info()
        cap = int(getattr(info, "vmem_capacity_bytes", 0) or 0)
        if cap > 0:
            return cap
    except Exception:
        pass
    return 64 << 20   # v7x per-TensorCore size (smallest across v5e/v6e/v7x)


def _pick_block_rows(bn, tcin_pad, tcout_pad, vmem_block_budget, *,
                     target_block_bytes=2 << 20, min_steps=8):
    """Rows per grid step.  Prefers: (a) fits the (padded-layout) VMEM budget,
    (b) ~1-2 MiB input blocks so the BlockSpec pipeline has a steady state,
    (c) >= min_steps grid steps (DMA/compute overlap, dual-TC balance on v7x,
        even step count preferred), (d) R dividing bn so there is no wrapper-side
    row-padding copy, (e) R % 8 == 0 (f32 sublane tiling)."""
    if bn <= 8:
        return bn                                            # full-dim block is legal
    bytes_per_row = (2 * tcin_pad + 2 * tcout_pad) * 4       # double-buffered in + out
    r_vmem = max(1, vmem_block_budget // bytes_per_row)
    r_blk = max(1, target_block_bytes // (tcin_pad * 4))
    r_steps = max(1, -(-bn // min_steps))                    # ceil(bn / min_steps)
    r = min(bn, r_vmem, r_blk, r_steps)
    r = max(8, (r // 8) * 8)
    # Prefer an R that divides bn exactly; prefer an even number of steps (v7x).
    for want_even in (True, False):
        cand = r
        while cand >= 8:
            if bn % cand == 0 and (not want_even or (bn // cand) % 2 == 0):
                return cand
            cand -= 8
    return r


def temporal_convolution(x, params, *, kernel_size, dilation=1,
                         return_attention=False):
    """Eval-mode forward of TemporalConvolution.

    x: [batch, num_nodes, seq_len, in_channels] -> [batch, num_nodes, seq_len, out_channels]
    """
    if kernel_size % 2 == 0:
        raise ValueError(
            f"TemporalConvolution kernel_size must be odd, got {kernel_size}")
    B, N, T, C_in = x.shape
    w = params["conv_weight"]                      # [C_out, C_in, K] (PyTorch layout)
    b = params["conv_bias"]
    gamma, beta = params["bn_gamma"], params["bn_beta"]
    rmean, rvar = params["bn_mean"], params["bn_var"]
    C_out = int(w.shape[0])
    K = kernel_size
    pad = (K - 1) // 2 * dilation
    BN = B * N
    TCIN, TCOUT = T * C_in, T * C_out

    # ---- padded-layout aware VMEM accounting (lanes -> 128, sublanes -> 8/16).
    tcin_pad = _round_up(TCIN, 128)
    tcout_pad = _round_up(TCOUT, 128)
    resident = 2 * _round_up(TCIN, 16) * tcout_pad * 2        # bf16 banded weight (x2 bufs)
    resident += 2 * 2 * 8 * tcout_pad * 4                     # scale + shift (resident)
    resident += 2 * 8 * 128 * 4                               # per-step flag block

    cap = _vmem_capacity_bytes()
    scoped_cap = min(int(cap * 3 // 4), 100 << 20)            # ~48 MiB on v7x, more on v5e/v6e
    if resident > scoped_cap // 2:
        # TODO(synk): fall back to a per-tap (K accumulated matmuls) kernel when the
        # banded (T*C_in, T*C_out) weight is too large to stay VMEM-resident.
        raise NotImplementedError(
            "banded TemporalConvolution weight too large for VMEM "
            f"(T={T}, C_in={C_in}, C_out={C_out})")

    R = _pick_block_rows(BN, tcin_pad, tcout_pad,
                         int(0.8 * (scoped_cap - resident)))
    G = pl.cdiv(BN, R)
    BN_rows = G * R

    # ---- lane-dense input view: (BN, T*C_in).  Free reshape, no transpose, no pad.
    x_flat = x.reshape(BN, TCIN).astype(jnp.float32)
    if BN_rows != BN:                              # only if no divisor-of-BN block exists
        x_flat = jnp.concatenate(
            [x_flat, jnp.zeros((BN_rows - BN, TCIN), jnp.float32)], axis=0)

    # ---- banded (block-Toeplitz) weight: the whole dilated 'same' conv becomes one
    #      matmul.  W_big[s*C_in+ci, t*C_out+co] = w[co, ci, k] iff s == t + k*d - pad.
    wk = jnp.transpose(w, (2, 1, 0)).astype(jnp.float32)      # (K, C_in, C_out)
    s_idx = jnp.arange(T)[:, None]
    t_idx = jnp.arange(T)[None, :]
    band = jnp.stack(
        [(s_idx == (t_idx + k * dilation - pad)) for k in range(K)],
        axis=0).astype(jnp.float32)                           # (K, T, T)
    w_big = jnp.einsum("kst,kio->sito", band, wk)             # (T, C_in, T, C_out)
    w_big = w_big.reshape(TCIN, TCOUT).astype(jnp.bfloat16)

    # ---- fold conv bias + BatchNorm (eval running stats) into per-channel
    #      scale/shift and tile them to the (1, T*C_out) lane layout of the output.
    scale = (gamma / jnp.sqrt(rvar + _BN_EPS)).astype(jnp.float32)
    shift = (b * scale + beta - rmean * scale).astype(jnp.float32)
    scale_t = jnp.tile(scale, (T,)).reshape(1, TCOUT)
    shift_t = jnp.tile(shift, (T,)).reshape(1, TCOUT)

    blk_bytes = R * (tcin_pad + tcout_pad) * 4
    vmem_limit = int(min(scoped_cap, max(2 * (resident + 2 * blk_bytes), 32 << 20)))

    out_slab, flags = pl.pallas_call(
        _tcn_kernel,
        out_shape=(
            jax.ShapeDtypeStruct((BN_rows, TCOUT), jnp.float32),
            jax.ShapeDtypeStruct((G, 1, 1), jnp.float32),
        ),
        grid_spec=pltpu.PrefetchScalarGridSpec(
            num_scalar_prefetch=0,
            grid=(G,),
            in_specs=[
                pl.BlockSpec((R, TCIN), lambda i: (i, 0)),
                # constant index maps -> weight / scale / shift stay VMEM-resident
                pl.BlockSpec((TCIN, TCOUT), lambda i: (0, 0)),
                pl.BlockSpec((1, TCOUT), lambda i: (0, 0)),
                pl.BlockSpec((1, TCOUT), lambda i: (0, 0)),
            ],
            out_specs=[
                pl.BlockSpec((R, TCOUT), lambda i: (i, 0)),      # lane-dense output
                pl.BlockSpec((1, 1, 1), lambda i: (i, 0, 0)),    # per-step finite flag
            ],
        ),
        compiler_params=pltpu.CompilerParams(
            dimension_semantics=("parallel",),
            vmem_limit_bytes=vmem_limit,
        ),
    )(x_flat, w_big, scale_t, shift_t)

    out = out_slab[:BN].reshape(B, N, T, C_out)

    # Module semantics: all-zeros if the input OR the output contained NaN/Inf.
    # (Finite f32 inputs above bf16 max (~3.39e38) overflow to inf on the bf16 MXU
    #  path and also zero the output; matched by _reference below.)
    bad = jnp.max(flags) > 0.0
    out = jnp.where(bad, jnp.zeros_like(out), out)

    if return_attention:
        # TODO(synk): on NaN/Inf input the PyTorch module early-returns a bare zero
        # tensor even when return_attention=True; under tracing we return the tuple.
        attention = jax.nn.softmax(out.mean(axis=-1), axis=-1)    # [B, N, T]
        return out, attention
    return out


def _reference(x, params, *, kernel_size, dilation):
    """Pure-JAX reference mirroring the kernel math (bf16 operands, f32 accum)."""
    B, N, T, C_in = x.shape
    w = params["conv_weight"]
    b = params["conv_bias"]
    K = kernel_size
    pad = (K - 1) // 2 * dilation
    C_out = w.shape[0]
    xb = x.reshape(B * N, T, C_in).astype(jnp.bfloat16).astype(jnp.float32)
    x_pad = jnp.pad(xb, ((0, 0), (pad, pad), (0, 0)))
    wk = jnp.transpose(w, (2, 1, 0)).astype(jnp.bfloat16).astype(jnp.float32)   # (K, C_in, C_out)
    acc = jnp.zeros((B * N, T, C_out), jnp.float32)
    for k in range(K):
        acc = acc + jnp.einsum("bti,io->bto",
                               x_pad[:, k * dilation:k * dilation + T, :], wk[k])
    scale = params["bn_gamma"] / jnp.sqrt(params["bn_var"] + _BN_EPS)
    shift = b * scale + params["bn_beta"] - params["bn_mean"] * scale
    y = jnp.maximum(acc * scale + shift, 0.0)
    return y.reshape(B, N, T, C_out)


if __name__ == "__main__":
    # x: [batch_size=2, num_nodes=4, seq_len=16, in_channels=8]
    B, N, T, C_in = 2, 4, 16, 8
    C_out, K, dilation = 16, 3, 2

    key = jax.random.PRNGKey(0)
    k_x, k_w, k_b, k_g, k_be, k_m, k_v = jax.random.split(key, 7)

    x = jax.random.normal(k_x, (B, N, T, C_in), dtype=jnp.float32)

    fan_in = C_in * K
    bound = 1.0 / (fan_in ** 0.5)
    params = {
        "conv_weight": jax.random.uniform(k_w, (C_out, C_in, K), jnp.float32, -bound, bound),
        "conv_bias": jax.random.uniform(k_b, (C_out,), jnp.float32, -bound, bound),
        "bn_gamma": 1.0 + 0.1 * jax.random.normal(k_g, (C_out,), jnp.float32),
        "bn_beta": 0.1 * jax.random.normal(k_be, (C_out,), jnp.float32),
        "bn_mean": 0.1 * jax.random.normal(k_m, (C_out,), jnp.float32),
        "bn_var": jnp.abs(1.0 + 0.1 * jax.random.normal(k_v, (C_out,), jnp.float32)),
    }

    out, attn = temporal_convolution(x, params, kernel_size=K, dilation=dilation,
                                     return_attention=True)
    out = jax.block_until_ready(out)
    attn = jax.block_until_ready(attn)

    ref = _reference(x, params, kernel_size=K, dilation=dilation)
    assert out.shape == (B, N, T, C_out)
    assert attn.shape == (B, N, T)
    max_err = float(jnp.max(jnp.abs(out - ref)))
    assert jnp.allclose(out, ref, atol=2e-3, rtol=2e-3), (
        f"mismatch vs reference, max abs err = {max_err}")

    # NaN/Inf guard path: the module returns all-zeros in that case.
    x_bad = x.at[0, 1, 2, 3].set(jnp.nan)
    out_bad = jax.block_until_ready(
        temporal_convolution(x_bad, params, kernel_size=K, dilation=dilation))
    assert out_bad.shape == (B, N, T, C_out)
    assert bool(jnp.all(out_bad == 0.0)), "NaN/Inf guard failed"

    print("KERNEL_OK")
</pallas_src>

<mosaic_0001>
module attributes {stable_mosaic.version = 11 : i64} {
  func.func @_tcn_kernel(%arg0: i32, %arg1: memref<8x128xf32, #tpu.memory_space<vmem>>, %arg2: memref<128x256xbf16, #tpu.memory_space<vmem>>, %arg3: memref<1x256xf32, #tpu.memory_space<vmem>>, %arg4: memref<1x256xf32, #tpu.memory_space<vmem>>, %arg5: memref<8x256xf32, #tpu.memory_space<vmem>>, %arg6: memref<1x1x1xf32, #tpu.memory_space<vmem>>) attributes {dimension_semantics = [#tpu.dimension_semantics<parallel>], iteration_bounds = array<i64: 1>, scalar_prefetch = 0 : i64, scratch_operands = 0 : i64, tpu.core_type = #tpu.core_type<tc>, window_params = [{transform_indices = @transform_0, window_bounds = array<i64: 8, 128>}, {pipeline_mode = #tpu.pipeline_mode<synchronous>, transform_indices = @transform_1, window_bounds = array<i64: 128, 256>}, {pipeline_mode = #tpu.pipeline_mode<synchronous>, transform_indices = @transform_2, window_bounds = array<i64: 1, 256>}, {pipeline_mode = #tpu.pipeline_mode<synchronous>, transform_indices = @transform_3, window_bounds = array<i64: 1, 256>}, {transform_indices = @transform_4, window_bounds = array<i64: 8, 256>}, {transform_indices = @transform_5, window_bounds = array<i64: 1, 1, 1>}]} {
    %c0 = arith.constant 0 : index
    %c0_0 = arith.constant 0 : index
    %0 = vector.load %arg1[%c0, %c0_0] : memref<8x128xf32, #tpu.memory_space<vmem>>, vector<8x128xf32>
    %1 = arith.truncf %0 : vector<8x128xf32> to vector<8x128xbf16>
    %c0_1 = arith.constant 0 : index
    %c0_2 = arith.constant 0 : index
    %2 = vector.load %arg2[%c0_1, %c0_2] : memref<128x256xbf16, #tpu.memory_space<vmem>>, vector<128x256xbf16>
    %cst = arith.constant dense<0.000000e+00> : vector<8x256xf32>
    %3 = tpu.matmul %1, %2, %cst {dimension_numbers = #tpu.dot_dimension_numbers<[1], [0], [0], [1], [0, 0, 1, 1], [], []>} : vector<8x128xbf16>, vector<128x256xbf16>, vector<8x256xf32> -> vector<8x256xf32>
    %c0_3 = arith.constant 0 : index
    %c0_4 = arith.constant 0 : index
    %4 = vector.load %arg3[%c0_3, %c0_4] : memref<1x256xf32, #tpu.memory_space<vmem>>, vector<1x256xf32>
    %5 = vector.broadcast %4 : vector<1x256xf32> to vector<8x256xf32>
    %6 = arith.mulf %3, %5 : vector<8x256xf32>
    %c0_5 = arith.constant 0 : index
    %c0_6 = arith.constant 0 : index
    %7 = vector.load %arg4[%c0_5, %c0_6] : memref<1x256xf32, #tpu.memory_space<vmem>>, vector<1x256xf32>
    %8 = vector.broadcast %7 : vector<1x256xf32> to vector<8x256xf32>
    %9 = arith.addf %6, %8 : vector<8x256xf32>
    %cst_7 = arith.constant 0.000000e+00 : f32
    %10 = vector.broadcast %cst_7 : f32 to vector<8x256xf32>
    %11 = arith.maximumf %9, %10 : vector<8x256xf32>
    %c0_8 = arith.constant 0 : index
    %c0_9 = arith.constant 0 : index
    %12 = vector.load %arg5[%c0_8, %c0_9] : memref<8x256xf32, #tpu.memory_space<vmem>>, vector<8x256xf32>
    tpu.vector_store %arg5[%c0_8, %c0_9], %11 {strides = array<i32>} : memref<8x256xf32, #tpu.memory_space<vmem>>, vector<8x256xf32>,
    %13 = math.absf %0 : vector<8x128xf32>
    %cst_10 = arith.constant 3.40282347E+38 : f32
    %14 = vector.broadcast %cst_10 : f32 to vector<8x128xf32>
    %15 = arith.cmpf ole, %13, %14 : vector<8x128xf32>
    %cst_11 = arith.constant 0.000000e+00 : f32
    %cst_12 = arith.constant 1.000000e+00 : f32
    %16 = vector.broadcast %cst_11 : f32 to vector<8x128xf32>
    %17 = vector.broadcast %cst_12 : f32 to vector<8x128xf32>
    %18 = arith.select %15, %16, %17 : vector<8x128xi1>, vector<8x128xf32>
    %19 = vector.shape_cast %18 : vector<8x128xf32> to vector<1x8x128xf32>
    %cst_13 = arith.constant dense<0xFF800000> : vector<1xf32>
    %20 = vector.multi_reduction <maximumf>, %19, %cst_13 [1, 2] : vector<1x8x128xf32> to vector<1xf32>
    %21 = vector.shape_cast %20 : vector<1xf32> to vector<1x1x1xf32>
    %22 = vector.extract %21[0, 0, 0] : f32 from vector<1x1x1xf32>
    %23 = math.absf %11 : vector<8x256xf32>
    %cst_14 = arith.constant 3.40282347E+38 : f32
    %24 = vector.broadcast %cst_14 : f32 to vector<8x256xf32>
    %25 = arith.cmpf ole, %23, %24 : vector<8x256xf32>
    %cst_15 = arith.constant 0.000000e+00 : f32
    %cst_16 = arith.constant 1.000000e+00 : f32
    %26 = vector.broadcast %cst_15 : f32 to vector<8x256xf32>
    %27 = vector.broadcast %cst_16 : f32 to vector<8x256xf32>
    %28 = arith.select %25, %26, %27 : vector<8x256xi1>, vector<8x256xf32>
    %29 = vector.shape_cast %28 : vector<8x256xf32> to vector<1x8x256xf32>
    %cst_17 = arith.constant dense<0xFF800000> : vector<1xf32>
    %30 = vector.multi_reduction <maximumf>, %29, %cst_17 [1, 2] : vector<1x8x256xf32> to vector<1xf32>
    %31 = vector.shape_cast %30 : vector<1xf32> to vector<1x1x1xf32>
    %32 = vector.extract %31[0, 0, 0] : f32 from vector<1x1x1xf32>
    %33 = arith.maximumf %22, %32 : f32
    %34 = vector.broadcast %33 : f32 to vector<1x1x1xf32>
    %c0_18 = arith.constant 0 : index
    %c0_19 = arith.constant 0 : index
    %c0_20 = arith.constant 0 : index
    %35 = vector.load %arg6[%c0_18, %c0_19, %c0_20] : memref<1x1x1xf32, #tpu.memory_space<vmem>>, vector<1x1x1xf32>
    tpu.vector_store %arg6[%c0_18, %c0_19, %c0_20], %34 {strides = array<i32>} : memref<1x1x1xf32, #tpu.memory_space<vmem>>, vector<1x1x1xf32>,
    return
  }
  func.func @transform_0(%arg0: i32) -> (i32, i32) {
    %c0_i32 = arith.constant 0 : i32
    %c0_i32_0 = arith.constant 0 : i32
    return %arg0, %c0_i32 : i32, i32
  }
  func.func @transform_1(%arg0: i32) -> (i32, i32) {
    %c0_i32 = arith.constant 0 : i32
    %c0_i32_0 = arith.constant 0 : i32
    %c0_i32_1 = arith.constant 0 : i32
    return %c0_i32, %c0_i32_0 : i32, i32
  }
  func.func @transform_2(%arg0: i32) -> (i32, i32) {
    %c0_i32 = arith.constant 0 : i32
    %c0_i32_0 = arith.constant 0 : i32
    %c0_i32_1 = arith.constant 0 : i32
    return %c0_i32, %c0_i32_0 : i32, i32
  }
  func.func @transform_3(%arg0: i32) -> (i32, i32) {
    %c0_i32 = arith.constant 0 : i32
    %c0_i32_0 = arith.constant 0 : i32
    %c0_i32_1 = arith.constant 0 : i32
    return %c0_i32, %c0_i32_0 : i32, i32
  }
  func.func @transform_4(%arg0: i32) -> (i32, i32) {
    %c0_i32 = arith.constant 0 : i32
    %c0_i32_0 = arith.constant 0 : i32
    return %arg0, %c0_i32 : i32, i32
  }
  func.func @transform_5(%arg0: i32) -> (i32, i32, i32) {
    %c0_i32 = arith.constant 0 : i32
    %c0_i32_0 = arith.constant 0 : i32
    %c0_i32_1 = arith.constant 0 : i32
    return %arg0, %c0_i32, %c0_i32_0 : i32, i32, i32
  }
}

</mosaic_0001>

<bundles_post_ra>
// kernel: tpu_custom_call.1
= control target key start
LH: loop header
LB: loop body
LE: loop exit
PB: predicated region body
PF: predicated region fallthrough
CT: control target
= control target key end

     0   :  { %11 = vsyncpa [#allocation3], 0  ;;  %s477_s0 = inlined_call_operand.hbm [shape: f32[8,128], index: 0, kind: input, shape index: {}]   ;;  %s478_s1 = inlined_call_operand.hbm [shape: bf16[128,256], index: 1, kind: input, shape index: {}]   ;;  %s479_s2 = inlined_call_operand.vmem [shape: f32[1,256], index: 2, kind: input, shape index: {}]   ;;  %s480_s3 = inlined_call_operand.vmem [shape: f32[1,256], index: 3, kind: input, shape index: {}]   ;;  %s481_s4 = inlined_call_operand.hbm [shape: f32[8,256], index: 4, kind: output, shape index: {0}]   ;;  %s482_s5 = inlined_call_operand.hbm [shape: f32[1,1,1], index: 5, kind: output, shape index: {1}]  }
   0x1   :  { %12 = vsyncpa [#allocation6], 0 }
   0x2   :  { %13 = vsyncpa [#allocation4], 0 }
   0x3   :  { %14 = vsyncpa [#allocation9], 0  ;;  %s421_s18 = smov [#allocation2]   ;;  %s422_s20 = smov [#allocation5]  }
   0x4   :  { %s21_s19 = sshll.u32 %s421_s18, 4  ;;  %s30_s21 = sshll.u32 %s422_s20, 4  ;;  %s22_s19 = int_to_ptr.vmem [resolvable:$true] %s21_s19  ;;  %s31_s21 = int_to_ptr.vmem [resolvable:$true] %s30_s21 }
   0x5   :  { %s341_s22 = scalar_lea.vmem %s22_s19, 128  ;;  %p346_p1 = scmp.lt.s32.totalorder %s22_s19, %s22_s19 }
   0x6   :  { %p342_p0 = scmp.ne.s32.totalorder %s22_s19, %s341_s22  ;;  %p347_p2 = scmp.lt.s32.totalorder %s341_s22, %s341_s22 }
   0x8   :  { %p348_p3 = por %p347_p2, %p346_p1 }
   0xa   :  { %p349_p4 = pnand %p348_p3, %p342_p0 }
   0xc   :  { %352 = shalt.err (!%p349_p4)
}
   0xd   :  { %24 = dma.hbm_to_vmem [thread:$0]  %s477_s0, 128, %s22_s19, [#allocation3]  }
   0xe   :  { %s361_s25 = scalar_lea.vmem %s31_s21, 2048  ;;  %p366_p6 = scmp.lt.s32.totalorder %s31_s21, %s31_s21 }
   0xf   :  { %p362_p5 = scmp.ne.s32.totalorder %s31_s21, %s361_s25  ;;  %p367_p7 = scmp.lt.s32.totalorder %s361_s25, %s361_s25 }
  0x11   :  { %p368_p8 = por %p367_p7, %p366_p6 }
  0x13   :  { %p369_p9 = pnand %p368_p8, %p362_p5 }
  0x15   :  { %372 = shalt.err (!%p369_p9)
}
  0x16   :  { %s423_s26 = smov 128   ;;  %s424_s27 = smov 8  }
  0x17   :  { %36 = dma.hbm_to_vmem [thread:$0]  %s478_s1, 2048, %s31_s21, [#allocation6], %s423_s26, %s423_s26, %s424_s27  }
  0x18   :  { %413 = dma.done.wait [#allocation3], 128  }
  0x19   :  { %414 = vsyncadd [#allocation3], 4294967168 }
  0x1a   :  { %415 = dma.done.wait [#allocation6], 2048  }
  0x1b   :  { %416 = vsyncadd [#allocation6], 4294965248  ;;  %v425_v0 = vmov 0   ;;  %v309_v1 = vld [vmem:[#allocation5 + $0x74] ss:$8 sps:$4 sm:$0xff]   ;;  %v426_v20 = vmov 1.0   ;;  %v189_v22 = vlaneseq }
  0x1c   :  { %178 = vmatprep.mubr.bf16.mxu0 %v425_v0  ;;  %v311_v2 = vld [vmem:[#allocation5 + $0x70] ss:$8 sps:$4 sm:$0xff]   ;;  %146 = vmatprep.subr.bf16.mxu0 %v309_v1  ;;  %v312_v3 = vld [vmem:[#allocation5 + $0x64] ss:$8 sps:$4 sm:$0xff]   ;;  %v314_v4 = vld [vmem:[#allocation5 + $0x60] ss:$8 sps:$4 sm:$0xff]  }
  0x1d   :  { %147 = vmatpush1.bf16.msra.mxu0 %v311_v2  ;;  %v315_v5 = vld [vmem:[#allocation5 + $0x54] ss:$8 sps:$4 sm:$0xff]   ;;  %v317_v6 = vld [vmem:[#allocation5 + $0x50] ss:$8 sps:$4 sm:$0xff]   ;;  %v318_v7 = vld [vmem:[#allocation5 + $0x44] ss:$8 sps:$4 sm:$0xff]  }
  0x1e   :  { %148 = vmatprep.subr.bf16.mxu0 %v312_v3  ;;  %v320_v8 = vld [vmem:[#allocation5 + $0x40] ss:$8 sps:$4 sm:$0xff]   ;;  %v321_v9 = vld [vmem:[#allocation5 + $0x34] ss:$8 sps:$4 sm:$0xff]   ;;  %v323_v10 = vld [vmem:[#allocation5 + $0x30] ss:$8 sps:$4 sm:$0xff]  }
  0x1f   :  { %v324_v11 = vld [vmem:[#allocation5 + $0x24] ss:$8 sps:$4 sm:$0xff]   ;;  %v326_v12 = vld [vmem:[#allocation5 + $0x20] ss:$8 sps:$4 sm:$0xff]   ;;  %v327_v13 = vld [vmem:[#allocation5 + $0x14] ss:$8 sps:$4 sm:$0xff]  }
  0x20   :  { %v329_v14 = vld [vmem:[#allocation5 + $0x10] ss:$8 sps:$4 sm:$0xff]   ;;  %v330_v15 = vld [vmem:[#allocation5 + $0x4] ss:$8 sps:$4 sm:$0xff]   ;;  %v332_v16 = vld [vmem:[#allocation5] ss:$8 sps:$4 sm:$0xff]  }
  0x21   :  { %149 = vmatpush1.bf16.msra.mxu0 %v314_v4  ;;  %v48_v17 = vld [vmem:[#allocation2] sm:$0xff]  ;;  %v190_v23 = vshrl.u32 %v189_v22, 7 }
  0x22   :  { %150 = vmatprep.subr.bf16.mxu0 %v315_v5  ;;  %v49_v18 = vpack.c.bf16 %v48_v17, %v48_v17  ;;  %v219_v19 = vand.u32 2147483647, %v48_v17  ;;  %v187_v25 = vld [vmem:[%s479_s2] sm:$0x3]  ;;  %s427_s2 = smov [#allocation7]  }
  0x23   :  { %v191_v24 = vsub.s32 0, %v190_v23  ;;  %v195_v26 = vsub.s32 1, %v190_v23  ;;  %v201_v27 = vld [vmem:[%s480_s3] sm:$0x3]  ;;  %s257_s3 = sshll.u32 %s427_s2, 4  ;;  %s258_s3 = int_to_ptr.vmem [resolvable:$true] %s257_s3 }
  0x24   :  { %vm220_vm0 = vcmp.le.f32.partialorder %v219_v19, 3.4028235e+38  ;;  %s373_s7 = scalar_lea.vmem %s258_s3, 256  ;;  %p378_p11 = scmp.lt.s32.totalorder %s258_s3, %s258_s3 }
  0x25   :  { %151 = vmatpush1.bf16.msra.mxu0 %v317_v6  ;;  %v221_v21 = vsel %vm220_vm0, 0.0, %v426_v20  ;;  %v192_v28 = vrot.slane %v187_v25, %v191_v24  ;;  %v206_v29 = vrot.slane %v201_v27, %v191_v24  ;;  %v196_v30 = vrot.slane %v187_v25, %v195_v26  ;;  %p374_p10 = scmp.ne.s32.totalorder %s258_s3, %s373_s7  ;;  %p379_p12 = scmp.lt.s32.totalorder %s373_s7, %s373_s7 }
  0x26   :  { %152 = vmatprep.subr.bf16.mxu0 %v318_v7  ;;  %222 = vmax.xlane.f32.xlu0 %v221_v21  ;;  %v210_v33 = vrot.slane %v201_v27, %v195_v26 }
  0x27   :  { %p380_p13 = por %p379_p12, %p378_p11 }
  0x29   :  { %153 = vmatpush1.bf16.msra.mxu0 %v320_v8  ;;  %p381_p0 = pnand %p380_p13, %p374_p10 }
  0x2a   :  { %154 = vmatprep.subr.bf16.mxu0 %v321_v9 }
  0x2d   :  { %155 = vmatpush1.bf16.msra.mxu0 %v323_v10 }
  0x2e   :  { %156 = vmatprep.subr.bf16.mxu0 %v324_v11 }
  0x31   :  { %157 = vmatpush1.bf16.msra.mxu0 %v326_v12 }
  0x32   :  { %158 = vmatprep.subr.bf16.mxu0 %v327_v13 }
  0x35   :  { %159 = vmatpush1.bf16.msra.mxu0 %v329_v14 }
  0x36   :  { %160 = vmatprep.subr.bf16.mxu0 %v330_v15 }
  0x39   :  { %161 = vmatpush1.bf16.msra.mxu0 %v332_v16 }
  0x3c   :  { %179 = vmatmul.mubr.bf16.vlgmr.msra.gmra.mxu0 %v49_v18 }
  0xaf   :  { %v223_v47 = vpop.xlane.xlu0 %222 }
  0xb0   :  { %v224_v48 = vrot.slane %v223_v47, 4 }
  0xb2   :  { %v225_v49 = vmax.f32 %v223_v47, %v224_v48 }
  0xb4   :  { %v226_v50 = vrot.slane %v225_v49, 2 }
  0xb6   :  { %v227_v51 = vmax.f32 %v225_v49, %v226_v50 }
  0xb8   :  { %v228_v52 = vrot.slane %v227_v51, 1 }
  0xba   :  { %v229_v53 = vmax.f32 %v227_v51, %v228_v52 }
  0xbc   :  { %297 = vpush %v229_v53 }
  0xfc   :  { %v180_v31 = vpop.f32.mrf.mxu0 }
  0xfd   :  { %v199_v32 = vmul.f32 %v192_v28, %v180_v31 }
  0xfe   :  { %v182_v34 = vpop.f32.mrf.mxu0 }
  0xff   :  { %v213_v35 = vadd.f32 %v206_v29, %v199_v32  ;;  %v200_v36 = vmul.f32 %v196_v30, %v182_v34 }
 0x100   :  { %v184_v37 = vpop.f32.mrf.mxu0 }
 0x101   :  { %v215_v38 = vmax.f32 %v213_v35, 0.0  ;;  %v214_v39 = vadd.f32 %v210_v33, %v200_v36 }
 0x102   :  { %v185_v40 = vpop.f32.mrf.mxu0 }
 0x103   :  { %217 = vst [vmem:[#allocation7] sm:$0xff] %v215_v38  ;;  %v216_v41 = vmax.f32 %v214_v39, 0.0  ;;  %v231_v42 = vand.u32 2147483647, %v215_v38 }
 0x105   :  { %218 = vst [vmem:[#allocation7 + $0x8] sm:$0xff] %v216_v41  ;;  %v232_v43 = vand.u32 2147483647, %v216_v41  ;;  %vm233_vm1 = vcmp.le.f32.partialorder %v231_v42, 3.4028235e+38 }
 0x106   :  { %v235_v44 = vsel %vm233_vm1, 0.0, %v426_v20 }
 0x107   :  { %vm234_vm2 = vcmp.le.f32.partialorder %v232_v43, 3.4028235e+38 }
 0x108   :  { %v236_v45 = vsel %vm234_vm2, 0.0, %v426_v20 }
 0x109   :  { %v237_v46 = vmax.f32 %v235_v44, %v236_v45 }
 0x10b   :  { %238 = vmax.xlane.f32.xlu0 %v237_v46 }
 0x10c   :  { %384 = shalt.err (!%p381_p0)
}
 0x10d   :  { %260 = dma.vmem_to_hbm [thread:$0]  %s258_s3, 256, %s481_s4, [#allocation4]   ;;  %vm249_vm3 = vcmask 0  }
 0x10e   :  { %s428_s10 = smov [#allocation8]   ;;  %s298_s12 = spop %297 }
 0x10f   :  { %s267_s11 = sshll.u32 %s428_s10, 4  ;;  %s268_s11 = int_to_ptr.vmem [resolvable:$true] %s267_s11 }
 0x110   :  { %s393_s15 = scalar_lea.vmem %s268_s11, 16  ;;  %s397_s4 = scalar_lea.vmem %s268_s11, 32 }
 0x111   :  { %p394_p1 = scmp.ne.s32.totalorder %s268_s11, %s393_s15  ;;  %p398_p2 = scmp.lt.s32.totalorder %s268_s11, %s268_s11 }
 0x112   :  { %p399_p3 = scmp.lt.s32.totalorder %s397_s4, %s393_s15 }
 0x114   :  { %p400_p4 = por %p399_p3, %p398_p2 }
 0x116   :  { %p401_p5 = pnand %p400_p4, %p394_p1 }
 0x194   :  { %v239_v54 = vpop.xlane.xlu0 %238 }
 0x195   :  { %v240_v55 = vrot.slane %v239_v54, 4 }
 0x197   :  { %v241_v56 = vmax.f32 %v239_v54, %v240_v55 }
 0x199   :  { %v242_v57 = vrot.slane %v241_v56, 2 }
 0x19b   :  { %v243_v58 = vmax.f32 %v241_v56, %v242_v57 }
 0x19d   :  { %v244_v59 = vrot.slane %v243_v58, 1 }
 0x19f   :  { %v245_v60 = vmax.f32 %v243_v58, %v244_v59 }
 0x1a1   :  { %299 = vpush %v245_v60 }
 0x1d2   :  { %s300_s13 = spop %299 }
 0x1d3   :  { %s247_s14 = smax.f32 %s300_s13, %s298_s12 }
 0x1d4   :  { %v248_v61 = vstv %s247_s14 }
 0x1d5   :  { %250 = vst.msk [vmem:[#allocation8] sm:$0x1] %vm249_vm3, %v248_v61 }
 0x1d6   :  { %404 = shalt.err (!%p401_p5)
}
 0x1d7   :  { %270 = dma.vmem_to_hbm [thread:$0]  %s268_s11, 16, %s482_s5, [#allocation9]  }
 0x1d8   :  { %417 = dma.done.wait [#allocation4], 256  }
 0x1d9   :  { %418 = vsyncadd [#allocation4], 4294967040 }
 0x1da   :  { %419 = dma.done.wait [#allocation9], 16  }
 0x1db   :  { %420 = vsyncadd [#allocation9], 4294967280 }
 0x1dc   :  { %277 = vsyncpa [#allocation3], 1 }
 0x1dd   :  { %278 = vsyncpa [#allocation6], 1 }
 0x1de   :  { %279 = vsyncpa [#allocation4], 1 }
 0x1df   :  { %280 = vsyncpa [#allocation9], 1 }

</bundles_post_ra>
